<compile_context>
chip_gen: v6e
topology: v6e:2x2x1
jax: 0.10.0
libtpu: 0.0.40
codegen_flags: <defaults>
</compile_context>

<pallas_src>
import functools

import jax
import jax.numpy as jnp
from jax.experimental import pallas as pl
from jax.experimental.pallas import tpu as pltpu

BN_EPS = 1e-5
SUBLANE = 8
MAX_BATCH_TILE = 512  # keeps double-buffered tiles well inside v5e's 16 MiB


def _round_up(x, m):
    return (x + m - 1) // m * m


def _choose_batch_tile(B):
    """Multiple-of-8 batch tile; >=2 grid tiles when B is large (v7x megacore)."""
    if B <= 2 * SUBLANE:
        return _round_up(B, SUBLANE)
    return min(MAX_BATCH_TILE, _round_up(pl.cdiv(B, 2), SUBLANE))


def _xavier_uniform(key, out_dim, in_dim, gain):
    # Matches nn.init.xavier_uniform_ on a (out, in) Linear weight.
    a = gain * (6.0 / (in_dim + out_dim)) ** 0.5
    w = jax.random.uniform(key, (out_dim, in_dim), jnp.float32, -a, a)
    return w.T  # stored as (Din, Dout) for x @ W


def _rgm_forward_kernel(x_ref, *refs, acts, latent_idx):
    """Fully fused forward: unrolled layer loop, VMEM-resident weights.

    refs = (w_0..w_{n-1}, b_0..b_{n-1}, recon_out, latent_out)
    """
    n = len(acts)
    w_refs = refs[:n]
    b_refs = refs[n:2 * n]
    recon_ref = refs[2 * n]
    latent_ref = refs[2 * n + 1]

    h = x_ref[...].astype(jnp.float32)
    for li, act in enumerate(acts):
        # MXU matmul: bf16 inputs, f32 accumulation. BN eval scale and the
        # identity laterals are already folded into the bf16 weights.
        y = jnp.dot(h.astype(jnp.bfloat16), w_refs[li][...],
                    preferred_element_type=jnp.float32)
        y = y + b_refs[li][...]  # f32 epilogue (bias + activation)
        if act == "relu":
            h = jnp.maximum(y, 0.0)
        else:  # sigmoid (final generative layer)
            h = jax.nn.sigmoid(y)
        if li == latent_idx:
            latent_ref[...] = h.astype(latent_ref.dtype)
    recon_ref[...] = h.astype(recon_ref.dtype)


class RGMMNISTPallas:
    """Parameter container + single-kernel forward driver."""

    def __init__(self, config, key):
        arch = config["architecture"]
        if arch["input_dim"] != 784:
            raise ValueError("Input dimension must be 784 for MNIST")
        self.input_dim = arch["input_dim"]
        self.hidden_dims = list(arch["hidden_dims"])
        self.latent_dim = arch["latent_dim"]
        self.batch_norm = bool(config["training"]["batch_norm"])

        rec_dims = [self.input_dim] + self.hidden_dims + [self.latent_dim]
        gen_dims = [self.latent_dim] + self.hidden_dims[::-1] + [self.input_dim]
        layer_dims = (list(zip(rec_dims[:-1], rec_dims[1:]))
                      + list(zip(gen_dims[:-1], gen_dims[1:])))
        n_rec = len(rec_dims) - 1
        n_layers = len(layer_dims)

        self.latent_idx = n_rec - 1
        # All layers ReLU except the last generative layer (Sigmoid).
        self.acts = ["relu"] * (n_layers - 1) + ["sigmoid"]

        gain = 2.0 ** 0.5  # calculate_gain('relu')
        bn_scale = (1.0 / (1.0 + BN_EPS) ** 0.5) if self.batch_norm else 1.0
        keys = jax.random.split(key, n_layers)

        self.weights = []   # bf16 (Din, Dout), BN + identity-lateral folded
        self.biases = []    # f32 (1, Dout), BN folded (zeros at init)
        for li, (din, dout) in enumerate(layer_dims):
            w = _xavier_uniform(keys[li], dout, din, gain) * bn_scale
            b = jnp.zeros((1, dout), jnp.float32) * bn_scale
            self.weights.append(w.astype(jnp.bfloat16))
            self.biases.append(b)

    def __call__(self, x):
        if x.ndim != 2 or x.shape[1] != self.input_dim:
            raise ValueError(
                f"Expected (batch, {self.input_dim}) input, got {x.shape}")
        B = x.shape[0]
        x = x.astype(jnp.float32)

        TB = _choose_batch_tile(B)
        grid = (pl.cdiv(B, TB),)  # ragged tail handled by Pallas store masking

        kernel = functools.partial(
            _rgm_forward_kernel, acts=tuple(self.acts),
            latent_idx=self.latent_idx)

        in_specs = [pl.BlockSpec((TB, self.input_dim), lambda i: (i, 0))]
        # Weight/bias blocks are the full arrays with a constant index_map, so
        # the pipeline keeps them VMEM-resident across grid steps (the ~0.6 MiB
        # of parameters is noise next to VMEM capacity, so no single-buffering
        # override is needed).
        for w in self.weights:
            in_specs.append(pl.BlockSpec(w.shape, lambda i: (0, 0)))
        for b in self.biases:
            in_specs.append(pl.BlockSpec(b.shape, lambda i: (0, 0)))

        out_specs = [
            pl.BlockSpec((TB, self.input_dim), lambda i: (i, 0)),
            pl.BlockSpec((TB, self.latent_dim), lambda i: (i, 0)),
        ]
        out_shape = [
            jax.ShapeDtypeStruct((B, self.input_dim), jnp.float32),
            jax.ShapeDtypeStruct((B, self.latent_dim), jnp.float32),
        ]

        reconstruction, latent = pl.pallas_call(
            kernel,
            grid=grid,
            in_specs=in_specs,
            out_specs=out_specs,
            out_shape=out_shape,
            compiler_params=pltpu.CompilerParams(
                dimension_semantics=("parallel",),
            ),
        )(x, *self.weights, *self.biases)
        return reconstruction, latent


def _reference_forward(model, x):
    """Pure-JAX reference using the same folded bf16 weights."""
    h = x.astype(jnp.float32)
    latent = None
    for li, (w, b, act) in enumerate(zip(model.weights, model.biases, model.acts)):
        y = jnp.dot(h.astype(jnp.bfloat16), w,
                    preferred_element_type=jnp.float32) + b
        h = jnp.maximum(y, 0.0) if act == "relu" else jax.nn.sigmoid(y)
        if li == model.latent_idx:
            latent = h
    return h, latent


def _check(model, x):
    recon, latent = model(x)
    jax.block_until_ready((recon, latent))
    B = x.shape[0]
    assert recon.shape == (B, model.input_dim), recon.shape
    assert latent.shape == (B, model.latent_dim), latent.shape
    assert bool(jnp.all(jnp.isfinite(recon)))
    assert bool(jnp.all(jnp.isfinite(latent)))
    # Final generative layer is sigmoid -> values in [0, 1].
    assert bool(jnp.all((recon >= 0.0) & (recon <= 1.0)))
    ref_recon, ref_latent = _reference_forward(model, x)
    assert bool(jnp.allclose(recon, ref_recon, atol=1e-2, rtol=1e-2))
    assert bool(jnp.allclose(latent, ref_latent, atol=1e-2, rtol=1e-2))


if __name__ == "__main__":
    config = {
        "architecture": {
            "input_dim": 784,          # fixed by the module's validation
            "hidden_dims": [128, 64],  # small hidden stack
            "latent_dim": 32,
        },
        "training": {"dropout_rate": 0.1, "batch_norm": True},
    }

    key = jax.random.PRNGKey(0)
    pkey, xkey, xkey2 = jax.random.split(key, 3)

    model = RGMMNISTPallas(config, pkey)

    # Small aligned batch: single grid tile.
    x = jax.random.uniform(xkey, (8, 784), dtype=jnp.float32)
    _check(model, x)

    # Non-divisible batch: 2 "parallel" grid tiles with a masked ragged tail
    # (no jnp.pad / host slicing anywhere).
    x2 = jax.random.uniform(xkey2, (20, 784), dtype=jnp.float32)
    _check(model, x2)

    print("KERNEL_OK")
</pallas_src>

<mosaic_0001>
module attributes {stable_mosaic.version = 11 : i64} {
  func.func @_rgm_forward_kernel(%arg0: i32, %arg1: memref<8x784xf32, #tpu.memory_space<vmem>>, %arg2: memref<784x128xbf16, #tpu.memory_space<vmem>>, %arg3: memref<128x64xbf16, #tpu.memory_space<vmem>>, %arg4: memref<64x32xbf16, #tpu.memory_space<vmem>>, %arg5: memref<32x64xbf16, #tpu.memory_space<vmem>>, %arg6: memref<64x128xbf16, #tpu.memory_space<vmem>>, %arg7: memref<128x784xbf16, #tpu.memory_space<vmem>>, %arg8: memref<1x128xf32, #tpu.memory_space<vmem>>, %arg9: memref<1x64xf32, #tpu.memory_space<vmem>>, %arg10: memref<1x32xf32, #tpu.memory_space<vmem>>, %arg11: memref<1x64xf32, #tpu.memory_space<vmem>>, %arg12: memref<1x128xf32, #tpu.memory_space<vmem>>, %arg13: memref<1x784xf32, #tpu.memory_space<vmem>>, %arg14: memref<8x784xf32, #tpu.memory_space<vmem>>, %arg15: memref<8x32xf32, #tpu.memory_space<vmem>>) attributes {dimension_semantics = [#tpu.dimension_semantics<parallel>], iteration_bounds = array<i64: 1>, scalar_prefetch = 0 : i64, scratch_operands = 0 : i64, tpu.core_type = #tpu.core_type<tc>, window_params = [{transform_indices = @transform_0, window_bounds = array<i64: 8, 784>}, {pipeline_mode = #tpu.pipeline_mode<synchronous>, transform_indices = @transform_1, window_bounds = array<i64: 784, 128>}, {pipeline_mode = #tpu.pipeline_mode<synchronous>, transform_indices = @transform_2, window_bounds = array<i64: 128, 64>}, {pipeline_mode = #tpu.pipeline_mode<synchronous>, transform_indices = @transform_3, window_bounds = array<i64: 64, 32>}, {pipeline_mode = #tpu.pipeline_mode<synchronous>, transform_indices = @transform_4, window_bounds = array<i64: 32, 64>}, {pipeline_mode = #tpu.pipeline_mode<synchronous>, transform_indices = @transform_5, window_bounds = array<i64: 64, 128>}, {pipeline_mode = #tpu.pipeline_mode<synchronous>, transform_indices = @transform_6, window_bounds = array<i64: 128, 784>}, {pipeline_mode = #tpu.pipeline_mode<synchronous>, transform_indices = @transform_7, window_bounds = array<i64: 1, 128>}, {pipeline_mode = #tpu.pipeline_mode<synchronous>, transform_indices = @transform_8, window_bounds = array<i64: 1, 64>}, {pipeline_mode = #tpu.pipeline_mode<synchronous>, transform_indices = @transform_9, window_bounds = array<i64: 1, 32>}, {pipeline_mode = #tpu.pipeline_mode<synchronous>, transform_indices = @transform_10, window_bounds = array<i64: 1, 64>}, {pipeline_mode = #tpu.pipeline_mode<synchronous>, transform_indices = @transform_11, window_bounds = array<i64: 1, 128>}, {pipeline_mode = #tpu.pipeline_mode<synchronous>, transform_indices = @transform_12, window_bounds = array<i64: 1, 784>}, {transform_indices = @transform_13, window_bounds = array<i64: 8, 784>}, {transform_indices = @transform_14, window_bounds = array<i64: 8, 32>}]} {
    %c0 = arith.constant 0 : index
    %c0_0 = arith.constant 0 : index
    %0 = vector.load %arg1[%c0, %c0_0] : memref<8x784xf32, #tpu.memory_space<vmem>>, vector<8x784xf32>
    %1 = arith.truncf %0 : vector<8x784xf32> to vector<8x784xbf16>
    %c0_1 = arith.constant 0 : index
    %c0_2 = arith.constant 0 : index
    %2 = vector.load %arg2[%c0_1, %c0_2] : memref<784x128xbf16, #tpu.memory_space<vmem>>, vector<784x128xbf16>
    %cst = arith.constant dense<0.000000e+00> : vector<8x128xf32>
    %3 = tpu.matmul %1, %2, %cst {dimension_numbers = #tpu.dot_dimension_numbers<[1], [0], [0], [1], [0, 0, 1, 1], [], []>} : vector<8x784xbf16>, vector<784x128xbf16>, vector<8x128xf32> -> vector<8x128xf32>
    %c0_3 = arith.constant 0 : index
    %c0_4 = arith.constant 0 : index
    %4 = vector.load %arg8[%c0_3, %c0_4] : memref<1x128xf32, #tpu.memory_space<vmem>>, vector<1x128xf32>
    %5 = vector.broadcast %4 : vector<1x128xf32> to vector<8x128xf32>
    %6 = arith.addf %3, %5 : vector<8x128xf32>
    %cst_5 = arith.constant 0.000000e+00 : f32
    %7 = vector.broadcast %cst_5 : f32 to vector<8x128xf32>
    %8 = arith.maximumf %6, %7 : vector<8x128xf32>
    %9 = arith.truncf %8 : vector<8x128xf32> to vector<8x128xbf16>
    %c0_6 = arith.constant 0 : index
    %c0_7 = arith.constant 0 : index
    %10 = vector.load %arg3[%c0_6, %c0_7] : memref<128x64xbf16, #tpu.memory_space<vmem>>, vector<128x64xbf16>
    %cst_8 = arith.constant dense<0.000000e+00> : vector<8x64xf32>
    %11 = tpu.matmul %9, %10, %cst_8 {dimension_numbers = #tpu.dot_dimension_numbers<[1], [0], [0], [1], [0, 0, 1, 1], [], []>} : vector<8x128xbf16>, vector<128x64xbf16>, vector<8x64xf32> -> vector<8x64xf32>
    %c0_9 = arith.constant 0 : index
    %c0_10 = arith.constant 0 : index
    %12 = vector.load %arg9[%c0_9, %c0_10] : memref<1x64xf32, #tpu.memory_space<vmem>>, vector<1x64xf32>
    %13 = vector.broadcast %12 : vector<1x64xf32> to vector<8x64xf32>
    %14 = arith.addf %11, %13 : vector<8x64xf32>
    %cst_11 = arith.constant 0.000000e+00 : f32
    %15 = vector.broadcast %cst_11 : f32 to vector<8x64xf32>
    %16 = arith.maximumf %14, %15 : vector<8x64xf32>
    %17 = arith.truncf %16 : vector<8x64xf32> to vector<8x64xbf16>
    %c0_12 = arith.constant 0 : index
    %c0_13 = arith.constant 0 : index
    %18 = vector.load %arg4[%c0_12, %c0_13] : memref<64x32xbf16, #tpu.memory_space<vmem>>, vector<64x32xbf16>
    %cst_14 = arith.constant dense<0.000000e+00> : vector<8x32xf32>
    %19 = tpu.matmul %17, %18, %cst_14 {dimension_numbers = #tpu.dot_dimension_numbers<[1], [0], [0], [1], [0, 0, 1, 1], [], []>} : vector<8x64xbf16>, vector<64x32xbf16>, vector<8x32xf32> -> vector<8x32xf32>
    %c0_15 = arith.constant 0 : index
    %c0_16 = arith.constant 0 : index
    %20 = vector.load %arg10[%c0_15, %c0_16] : memref<1x32xf32, #tpu.memory_space<vmem>>, vector<1x32xf32>
    %21 = vector.broadcast %20 : vector<1x32xf32> to vector<8x32xf32>
    %22 = arith.addf %19, %21 : vector<8x32xf32>
    %cst_17 = arith.constant 0.000000e+00 : f32
    %23 = vector.broadcast %cst_17 : f32 to vector<8x32xf32>
    %24 = arith.maximumf %22, %23 : vector<8x32xf32>
    %c0_18 = arith.constant 0 : index
    %c0_19 = arith.constant 0 : index
    %25 = vector.load %arg15[%c0_18, %c0_19] : memref<8x32xf32, #tpu.memory_space<vmem>>, vector<8x32xf32>
    tpu.vector_store %arg15[%c0_18, %c0_19], %24 {strides = array<i32>} : memref<8x32xf32, #tpu.memory_space<vmem>>, vector<8x32xf32>,
    %26 = arith.truncf %24 : vector<8x32xf32> to vector<8x32xbf16>
    %c0_20 = arith.constant 0 : index
    %c0_21 = arith.constant 0 : index
    %27 = vector.load %arg5[%c0_20, %c0_21] : memref<32x64xbf16, #tpu.memory_space<vmem>>, vector<32x64xbf16>
    %cst_22 = arith.constant dense<0.000000e+00> : vector<8x64xf32>
    %28 = tpu.matmul %26, %27, %cst_22 {dimension_numbers = #tpu.dot_dimension_numbers<[1], [0], [0], [1], [0, 0, 1, 1], [], []>} : vector<8x32xbf16>, vector<32x64xbf16>, vector<8x64xf32> -> vector<8x64xf32>
    %c0_23 = arith.constant 0 : index
    %c0_24 = arith.constant 0 : index
    %29 = vector.load %arg11[%c0_23, %c0_24] : memref<1x64xf32, #tpu.memory_space<vmem>>, vector<1x64xf32>
    %30 = vector.broadcast %29 : vector<1x64xf32> to vector<8x64xf32>
    %31 = arith.addf %28, %30 : vector<8x64xf32>
    %cst_25 = arith.constant 0.000000e+00 : f32
    %32 = vector.broadcast %cst_25 : f32 to vector<8x64xf32>
    %33 = arith.maximumf %31, %32 : vector<8x64xf32>
    %34 = arith.truncf %33 : vector<8x64xf32> to vector<8x64xbf16>
    %c0_26 = arith.constant 0 : index
    %c0_27 = arith.constant 0 : index
    %35 = vector.load %arg6[%c0_26, %c0_27] : memref<64x128xbf16, #tpu.memory_space<vmem>>, vector<64x128xbf16>
    %cst_28 = arith.constant dense<0.000000e+00> : vector<8x128xf32>
    %36 = tpu.matmul %34, %35, %cst_28 {dimension_numbers = #tpu.dot_dimension_numbers<[1], [0], [0], [1], [0, 0, 1, 1], [], []>} : vector<8x64xbf16>, vector<64x128xbf16>, vector<8x128xf32> -> vector<8x128xf32>
    %c0_29 = arith.constant 0 : index
    %c0_30 = arith.constant 0 : index
    %37 = vector.load %arg12[%c0_29, %c0_30] : memref<1x128xf32, #tpu.memory_space<vmem>>, vector<1x128xf32>
    %38 = vector.broadcast %37 : vector<1x128xf32> to vector<8x128xf32>
    %39 = arith.addf %36, %38 : vector<8x128xf32>
    %cst_31 = arith.constant 0.000000e+00 : f32
    %40 = vector.broadcast %cst_31 : f32 to vector<8x128xf32>
    %41 = arith.maximumf %39, %40 : vector<8x128xf32>
    %42 = arith.truncf %41 : vector<8x128xf32> to vector<8x128xbf16>
    %c0_32 = arith.constant 0 : index
    %c0_33 = arith.constant 0 : index
    %43 = vector.load %arg7[%c0_32, %c0_33] : memref<128x784xbf16, #tpu.memory_space<vmem>>, vector<128x784xbf16>
    %cst_34 = arith.constant dense<0.000000e+00> : vector<8x784xf32>
    %44 = tpu.matmul %42, %43, %cst_34 {dimension_numbers = #tpu.dot_dimension_numbers<[1], [0], [0], [1], [0, 0, 1, 1], [], []>} : vector<8x128xbf16>, vector<128x784xbf16>, vector<8x784xf32> -> vector<8x784xf32>
    %c0_35 = arith.constant 0 : index
    %c0_36 = arith.constant 0 : index
    %45 = vector.load %arg13[%c0_35, %c0_36] : memref<1x784xf32, #tpu.memory_space<vmem>>, vector<1x784xf32>
    %46 = vector.broadcast %45 : vector<1x784xf32> to vector<8x784xf32>
    %47 = arith.addf %44, %46 : vector<8x784xf32>
    %48 = arith.negf %47 : vector<8x784xf32>
    %49 = math.exp %48 : vector<8x784xf32>
    %cst_37 = arith.constant 1.000000e+00 : f32
    %50 = vector.broadcast %cst_37 : f32 to vector<8x784xf32>
    %51 = arith.addf %50, %49 : vector<8x784xf32>
    %52 = arith.divf %50, %51 : vector<8x784xf32>
    %c0_38 = arith.constant 0 : index
    %c0_39 = arith.constant 0 : index
    %53 = vector.load %arg14[%c0_38, %c0_39] : memref<8x784xf32, #tpu.memory_space<vmem>>, vector<8x784xf32>
    tpu.vector_store %arg14[%c0_38, %c0_39], %52 {strides = array<i32>} : memref<8x784xf32, #tpu.memory_space<vmem>>, vector<8x784xf32>,
    return
  }
  func.func @transform_0(%arg0: i32) -> (i32, i32) {
    %c0_i32 = arith.constant 0 : i32
    %c0_i32_0 = arith.constant 0 : i32
    return %arg0, %c0_i32 : i32, i32
  }
  func.func @transform_1(%arg0: i32) -> (i32, i32) {
    %c0_i32 = arith.constant 0 : i32
    %c0_i32_0 = arith.constant 0 : i32
    %c0_i32_1 = arith.constant 0 : i32
    return %c0_i32, %c0_i32_0 : i32, i32
  }
  func.func @transform_2(%arg0: i32) -> (i32, i32) {
    %c0_i32 = arith.constant 0 : i32
    %c0_i32_0 = arith.constant 0 : i32
    %c0_i32_1 = arith.constant 0 : i32
    return %c0_i32, %c0_i32_0 : i32, i32
  }
  func.func @transform_3(%arg0: i32) -> (i32, i32) {
    %c0_i32 = arith.constant 0 : i32
    %c0_i32_0 = arith.constant 0 : i32
    %c0_i32_1 = arith.constant 0 : i32
    return %c0_i32, %c0_i32_0 : i32, i32
  }
  func.func @transform_4(%arg0: i32) -> (i32, i32) {
    %c0_i32 = arith.constant 0 : i32
    %c0_i32_0 = arith.constant 0 : i32
    %c0_i32_1 = arith.constant 0 : i32
    return %c0_i32, %c0_i32_0 : i32, i32
  }
  func.func @transform_5(%arg0: i32) -> (i32, i32) {
    %c0_i32 = arith.constant 0 : i32
    %c0_i32_0 = arith.constant 0 : i32
    %c0_i32_1 = arith.constant 0 : i32
    return %c0_i32, %c0_i32_0 : i32, i32
  }
  func.func @transform_6(%arg0: i32) -> (i32, i32) {
    %c0_i32 = arith.constant 0 : i32
    %c0_i32_0 = arith.constant 0 : i32
    %c0_i32_1 = arith.constant 0 : i32
    return %c0_i32, %c0_i32_0 : i32, i32
  }
  func.func @transform_7(%arg0: i32) -> (i32, i32) {
    %c0_i32 = arith.constant 0 : i32
    %c0_i32_0 = arith.constant 0 : i32
    %c0_i32_1 = arith.constant 0 : i32
    return %c0_i32, %c0_i32_0 : i32, i32
  }
  func.func @transform_8(%arg0: i32) -> (i32, i32) {
    %c0_i32 = arith.constant 0 : i32
    %c0_i32_0 = arith.constant 0 : i32
    %c0_i32_1 = arith.constant 0 : i32
    return %c0_i32, %c0_i32_0 : i32, i32
  }
  func.func @transform_9(%arg0: i32) -> (i32, i32) {
    %c0_i32 = arith.constant 0 : i32
    %c0_i32_0 = arith.constant 0 : i32
    %c0_i32_1 = arith.constant 0 : i32
    return %c0_i32, %c0_i32_0 : i32, i32
  }
  func.func @transform_10(%arg0: i32) -> (i32, i32) {
    %c0_i32 = arith.constant 0 : i32
    %c0_i32_0 = arith.constant 0 : i32
    %c0_i32_1 = arith.constant 0 : i32
    return %c0_i32, %c0_i32_0 : i32, i32
  }
  func.func @transform_11(%arg0: i32) -> (i32, i32) {
    %c0_i32 = arith.constant 0 : i32
    %c0_i32_0 = arith.constant 0 : i32
    %c0_i32_1 = arith.constant 0 : i32
    return %c0_i32, %c0_i32_0 : i32, i32
  }
  func.func @transform_12(%arg0: i32) -> (i32, i32) {
    %c0_i32 = arith.constant 0 : i32
    %c0_i32_0 = arith.constant 0 : i32
    %c0_i32_1 = arith.constant 0 : i32
    return %c0_i32, %c0_i32_0 : i32, i32
  }
  func.func @transform_13(%arg0: i32) -> (i32, i32) {
    %c0_i32 = arith.constant 0 : i32
    %c0_i32_0 = arith.constant 0 : i32
    return %arg0, %c0_i32 : i32, i32
  }
  func.func @transform_14(%arg0: i32) -> (i32, i32) {
    %c0_i32 = arith.constant 0 : i32
    %c0_i32_0 = arith.constant 0 : i32
    return %arg0, %c0_i32 : i32, i32
  }
}

</mosaic_0001>

<bundles_post_ra>
// kernel: tpu_custom_call.1
= control target key start
LH: loop header
LB: loop body
LE: loop exit
PB: predicated region body
PF: predicated region fallthrough
CT: control target
= control target key end

     0   :  { %20 = vsyncpa [#allocation3], 0  ;;  %v2149_v44 = vmov 0.0   ;;  %vm2150_vm0 = vmmov 0   ;;  %vm462_vm1 = vcmask 130048   ;;  %s2686_s0 = inlined_call_operand.vmem [shape: f32[8,784], index: 0, kind: input, shape index: {}]   ;;  %s2687_s1 = inlined_call_operand.vmem [shape: bf16[784,128], index: 1, kind: input, shape index: {}]   ;;  %s2688_s2 = inlined_call_operand.vmem [shape: bf16[128,64], index: 2, kind: input, shape index: {}]   ;;  %s2689_s3 = inlined_call_operand.vmem [shape: bf16[64,32], index: 3, kind: input, shape index: {}]   ;;  %s2690_s4 = inlined_call_operand.vmem [shape: bf16[32,64], index: 4, kind: input, shape index: {}]   ;;  %s2691_s5 = inlined_call_operand.vmem [shape: bf16[64,128], index: 5, kind: input, shape index: {}]   ;;  %s2692_s6 = inlined_call_operand.vmem [shape: bf16[128,784], index: 6, kind: input, shape index: {}]   ;;  %s2693_s7 = inlined_call_operand.vmem [shape: f32[1,128], index: 7, kind: input, shape index: {}]   ;;  %s2694_s8 = inlined_call_operand.vmem [shape: f32[1,64], index: 8, kind: input, shape index: {}]   ;;  %s2695_s9 = inlined_call_operand.vmem [shape: f32[1,32], index: 9, kind: input, shape index: {}]   ;;  %s2696_s10 = inlined_call_operand.vmem [shape: f32[1,64], index: 10, kind: input, shape index: {}]   ;;  %s2697_s11 = inlined_call_operand.vmem [shape: f32[1,128], index: 11, kind: input, shape index: {}]   ;;  %s2698_s12 = inlined_call_operand.vmem [shape: f32[1,784], index: 12, kind: input, shape index: {}]   ;;  %s2699_s13 = inlined_call_operand.hbm [shape: f32[8,784], index: 13, kind: output, shape index: {0}]   ;;  %s2700_s14 = inlined_call_operand.hbm [shape: f32[8,32], index: 14, kind: output, shape index: {1}]  }
   0x1   :  { %v1930_v0 = vld [vmem:[%s2687_s1 + $0x78] sm:$0xff]   ;;  %v1934_v4 = vld [vmem:[%s2687_s1 + $0x70] sm:$0xff]   ;;  %v1938_v8 = vld [vmem:[%s2687_s1 + $0x68] sm:$0xff]  }
   0x2   :  { %v1931_v1 = vld [vmem:[%s2687_s1 + $0x38] sm:$0xff]   ;;  %1748 = vmatprep.subr.bf16.mxu0 %v1930_v0  ;;  %v1935_v5 = vld [vmem:[%s2687_s1 + $0x30] sm:$0xff]   ;;  %v1939_v9 = vld [vmem:[%s2687_s1 + $0x28] sm:$0xff]  }
   0x3   :  { %v1932_v2 = vld [vmem:[%s2687_s1 + $0xf8] sm:$0xff]   ;;  %1749 = vmatpush3.bf16.msra.mxu0 %v1931_v1  ;;  %v1936_v6 = vld [vmem:[%s2687_s1 + $0xf0] sm:$0xff]   ;;  %v1940_v10 = vld [vmem:[%s2687_s1 + $0xe8] sm:$0xff]  }
   0x4   :  { %v1933_v3 = vld [vmem:[%s2687_s1 + $0xb8] sm:$0xff]   ;;  %1770 = vmatprep.subr.bf16.mxu1 %v1932_v2  ;;  %1750 = vmatprep.subr.bf16.mxu0 %v1934_v4  ;;  %v1937_v7 = vld [vmem:[%s2687_s1 + $0xb0] sm:$0xff]   ;;  %v1941_v11 = vld [vmem:[%s2687_s1 + $0xa8] sm:$0xff]  }
   0x5   :  { %1771 = vmatpush3.bf16.msra.mxu1 %v1933_v3  ;;  %v1942_v12 = vld [vmem:[%s2687_s1 + $0x60] sm:$0xff]   ;;  %v1946_v16 = vld [vmem:[%s2687_s1 + $0x58] sm:$0xff]   ;;  %v1950_v20 = vld [vmem:[%s2687_s1 + $0x50] sm:$0xff]  }
   0x6   :  { %1772 = vmatprep.subr.bf16.mxu1 %v1936_v6  ;;  %v1943_v13 = vld [vmem:[%s2687_s1 + $0x20] sm:$0xff]   ;;  %v1947_v17 = vld [vmem:[%s2687_s1 + $0x18] sm:$0xff]   ;;  %v1951_v21 = vld [vmem:[%s2687_s1 + $0x10] sm:$0xff]  }
   0x7   :  { %1751 = vmatpush3.bf16.msra.mxu0 %v1935_v5  ;;  %v1944_v14 = vld [vmem:[%s2687_s1 + $0xe0] sm:$0xff]   ;;  %v1948_v18 = vld [vmem:[%s2687_s1 + $0xd8] sm:$0xff]   ;;  %v1952_v22 = vld [vmem:[%s2687_s1 + $0xd0] sm:$0xff]  }
   0x8   :  { %1752 = vmatprep.subr.bf16.mxu0 %v1938_v8  ;;  %v1945_v15 = vld [vmem:[%s2687_s1 + $0xa0] sm:$0xff]   ;;  %v1949_v19 = vld [vmem:[%s2687_s1 + $0x98] sm:$0xff]   ;;  %v1953_v23 = vld [vmem:[%s2687_s1 + $0x90] sm:$0xff]  }
   0x9   :  { %1773 = vmatpush3.bf16.msra.mxu1 %v1937_v7  ;;  %v1954_v24 = vld [vmem:[%s2687_s1 + $0x48] sm:$0xff]   ;;  %v1958_v28 = vld [vmem:[%s2687_s1 + $0x40] sm:$0xff]   ;;  %v1962_v36 = vld [vmem:[%s2687_s1 + $0x178] sm:$0xff]  }
   0xa   :  { %1774 = vmatprep.subr.bf16.mxu1 %v1940_v10  ;;  %v1955_v25 = vld [vmem:[%s2687_s1 + $0x8] sm:$0xff]   ;;  %v1959_v29 = vld [vmem:[%s2687_s1] sm:$0xff]   ;;  %v52_v37 = vld [vmem:[%s2686_s0 + $0x18] sm:$0xff] }
   0xb   :  { %1753 = vmatpush3.bf16.msra.mxu0 %v1939_v9  ;;  %v1956_v26 = vld [vmem:[%s2687_s1 + $0xc8] sm:$0xff]   ;;  %v1960_v30 = vld [vmem:[%s2687_s1 + $0xc0] sm:$0xff]   ;;  %v59_v38 = vpack.c.bf16 %v52_v37, %v52_v37  ;;  %v1963_v39 = vld [vmem:[%s2687_s1 + $0x138] sm:$0xff]  }
   0xc   :  { %1754 = vmatprep.subr.bf16.mxu0 %v1942_v12  ;;  %v1957_v27 = vld [vmem:[%s2687_s1 + $0x88] sm:$0xff]   ;;  %v1961_v33 = vld [vmem:[%s2687_s1 + $0x80] sm:$0xff]   ;;  %v51_v40 = vld [vmem:[%s2686_s0 + $0x10] sm:$0xff] }
   0xd   :  { %1775 = vmatpush3.bf16.msra.mxu1 %v1941_v11  ;;  %v50_v31 = vld [vmem:[%s2686_s0 + $0x8] sm:$0xff]  ;;  %v49_v34 = vld [vmem:[%s2686_s0] sm:$0xff]  ;;  %538 = vmatprep.mubr.bf16.mxu1 %v59_v38  ;;  %v58_v41 = vpack.c.bf16 %v51_v40, %v51_v40  ;;  %v1964_v42 = vld [vmem:[%s2687_s1 + $0x170] sm:$0xff]  }
   0xe   :  { %1776 = vmatprep.subr.bf16.mxu1 %v1944_v14  ;;  %v57_v32 = vpack.c.bf16 %v50_v31, %v50_v31  ;;  %v56_v35 = vpack.c.bf16 %v49_v34, %v49_v34  ;;  %v1965_v43 = vld [vmem:[%s2687_s1 + $0x130] sm:$0xff]   ;;  %v1966_v45 = vld [vmem:[%s2687_s1 + $0x168] sm:$0xff]   ;;  %v1968_v47 = vld [vmem:[%s2687_s1 + $0x160] sm:$0xff]  }
   0xf   :  { %1755 = vmatpush3.bf16.msra.mxu0 %v1943_v13  ;;  %v1967_v46 = vld [vmem:[%s2687_s1 + $0x128] sm:$0xff]   ;;  %v1969_v48 = vld [vmem:[%s2687_s1 + $0x120] sm:$0xff]   ;;  %v1970_v49 = vld [vmem:[%s2687_s1 + $0x158] sm:$0xff]  }
  0x10   :  { %1756 = vmatprep.subr.bf16.mxu0 %v1946_v16  ;;  %498 = vmatprep.mubr.bf16.mxu0 %v57_v32  ;;  %v1971_v50 = vld [vmem:[%s2687_s1 + $0x118] sm:$0xff]   ;;  %v1972_v51 = vld [vmem:[%s2687_s1 + $0x150] sm:$0xff]   ;;  %v1978_v53 = vld [vmem:[%s2687_s1 + $0x180] sm:$0xff]  }
  0x11   :  { %1777 = vmatpush3.bf16.msra.mxu1 %v1945_v15  ;;  %v1973_v52 = vld [vmem:[%s2687_s1 + $0x110] sm:$0xff]   ;;  %v54_v54 = vld [vmem:[%s2686_s0 + $0x28] sm:$0xff]  ;;  %v1976_v60 = vld [vmem:[%s2687_s1 + $0x140] sm:$0xff]  }
  0x12   :  { %1778 = vmatprep.subr.bf16.mxu1 %v1948_v18  ;;  %v1974_v55 = vld [vmem:[%s2687_s1 + $0x148] sm:$0xff]   ;;  %v61_v56 = vpack.c.bf16 %v54_v54, %v54_v54  ;;  %v55_v57 = vld [vmem:[%s2686_s0 + $0x30] sm:$0xff]  ;;  %v1977_v61 = vld [vmem:[%s2687_s1 + $0x100] sm:$0xff]  }
  0x13   :  { %1757 = vmatpush3.bf16.msra.mxu0 %v1947_v17  ;;  %v62_v58 = vpack.c.bf16 %v55_v57, %v55_v57  ;;  %v1975_v59 = vld [vmem:[%s2687_s1 + $0x108] sm:$0xff]   ;;  %v53_v62 = vld [vmem:[%s2686_s0 + $0x20] sm:$0xff] }
  0x14   :  { %1758 = vmatprep.subr.bf16.mxu0 %v1950_v20  ;;  %v60_v63 = vpack.c.bf16 %v53_v62, %v53_v62 }
  0x15   :  { %1779 = vmatpush3.bf16.msra.mxu1 %v1949_v19 }
  0x16   :  { %1780 = vmatprep.subr.bf16.mxu1 %v1952_v22 }
  0x17   :  { %1759 = vmatpush3.bf16.msra.mxu0 %v1951_v21 }
  0x18   :  { %1760 = vmatprep.subr.bf16.mxu0 %v1954_v24 }
  0x19   :  { %1781 = vmatpush3.bf16.msra.mxu1 %v1953_v23 }
  0x1a   :  { %1782 = vmatprep.subr.bf16.mxu1 %v1956_v26 }
  0x1b   :  { %1761 = vmatpush3.bf16.msra.mxu0 %v1955_v25 }
  0x1c   :  { %1762 = vmatprep.subr.bf16.mxu0 %v1958_v28 }
  0x1d   :  { %1783 = vmatpush3.bf16.msra.mxu1 %v1957_v27 }
  0x1e   :  { %1784 = vmatprep.subr.bf16.mxu1 %v1960_v30 }
  0x1f   :  { %1763 = vmatpush3.bf16.msra.mxu0 %v1959_v29 }
  0x20   :  { %1792 = vmatprep.subr.bf16.mxu0 %v1962_v36 }
  0x21   :  { %1785 = vmatpush3.bf16.msra.mxu1 %v1961_v33 }
  0x22   :  { %499 = vmatmul.mubr.bf16.vlgmr.msra.gmra.mxu0 %v56_v35  ;;  %1847 = vmatprep.subr.bf16.mxu1 %v2149_v44 }
  0x23   :  { %1793 = vmatpush3.bf16.msra.mxu0 %v1963_v39  ;;  %578 = vmatprep.mubr.bf16.mxu0 %v61_v56 }
  0x24   :  { %539 = vmatmul.mubr.bf16.vlgmr.msra.gmra.mxu1 %v58_v41  ;;  %1794 = vmatprep.subr.bf16.mxu0 %v1964_v42 }
  0x25   :  { %1849 = vmatprep.mubr.msk.bf16.mxu1 %vm2150_vm0, %v2149_v44  ;;  %1848 = vmatpush3.bf16.msra.mxu1 %v1978_v53 }
  0x26   :  { %1853 = vmatprep.subr.bf16.mxu1 %v2149_v44 }
  0x27   :  { %1795 = vmatpush3.bf16.msra.mxu0 %v1965_v43 }
  0x28   :  { %1796 = vmatprep.subr.bf16.mxu0 %v1966_v45 }
  0x2b   :  { %1797 = vmatpush3.bf16.msra.mxu0 %v1967_v46 }
  0x2c   :  { %1798 = vmatprep.subr.bf16.mxu0 %v1968_v47  ;;  %1850 = vmatmul.mubr.msk.bf16.vlgmr.msra.gmra.mxu1 %vm462_vm1, %v62_v58 }
  0x2d   :  { %1869 = vmatprep.mubr.msk.bf16.mxu1 %vm2150_vm0, %v2149_v44 }
  0x2f   :  { %1799 = vmatpush3.bf16.msra.mxu0 %v1969_v48 }
  0x30   :  { %1800 = vmatprep.subr.bf16.mxu0 %v1970_v49 }
  0x33   :  { %1801 = vmatpush3.bf16.msra.mxu0 %v1971_v50 }
  0x34   :  { %1802 = vmatprep.subr.bf16.mxu0 %v1972_v51 }
  0x37   :  { %1803 = vmatpush3.bf16.msra.mxu0 %v1973_v52 }
  0x38   :  { %1804 = vmatprep.subr.bf16.mxu0 %v1974_v55 }
  0x3b   :  { %1805 = vmatpush3.bf16.msra.mxu0 %v1975_v59 }
  0x3c   :  { %1806 = vmatprep.subr.bf16.mxu0 %v1976_v60 }
  0x3f   :  { %1807 = vmatpush3.bf16.msra.mxu0 %v1977_v61 }
  0x40   :  { %1873 = vmatprep.subr.bf16.mxu0 %v2149_v44 }
  0x42   :  { %579 = vmatmul.mubr.bf16.vlgmr.msra.gmra.mxu0 %v60_v63 }
  0x43   :  { %1881 = vmatprep.mubr.msk.bf16.mxu0 %vm2150_vm0, %v2149_v44 }
  0x44   :  { %21 = vsyncpa [#allocation5], 0  ;;  %v1979_v0 = vld [vmem:[%s2688_s2 + $0x38] sm:$0xff]   ;;  %v1980_v1 = vld [vmem:[%s2688_s2 + $0x30] sm:$0xff]   ;;  %vm780_vm2 = vcmask 523264   ;;  %vm825_vm3 = vcmask 261120  }
  0x45   :  { %1854 = vmatpush3.bf16.msra.mxu1 %v1979_v0  ;;  %v1981_v2 = vld [vmem:[%s2688_s2 + $0x28] sm:$0xff]   ;;  %v1982_v3 = vld [vmem:[%s2688_s2 + $0x20] sm:$0xff]   ;;  %v1983_v4 = vld [vmem:[%s2688_s2 + $0x18] sm:$0xff]   ;;  %s2152_s19 = smov [#allocation4]  }
  0x46   :  { %1855 = vmatprep.subr.bf16.mxu1 %v2149_v44  ;;  %v1984_v5 = vld [vmem:[%s2688_s2 + $0x10] sm:$0xff]   ;;  %v1985_v6 = vld [vmem:[%s2688_s2 + $0x8] sm:$0xff]   ;;  %v1986_v7 = vld [vmem:[%s2688_s2] sm:$0xff]  }
  0x47   :  { %v1987_v8 = vld [vmem:[%s2689_s3 + $0x18] sm:$0xff]   ;;  %v1988_v9 = vld [vmem:[%s2689_s3 + $0x10] sm:$0xff]   ;;  %v1609_v23 = vld [vmem:[%s2693_s7] ss:$0 sm:$0xff] }
  0x48   :  { %1874 = vmatpush3.bf16.msra.mxu0 %v1987_v8  ;;  %v1989_v36 = vld [vmem:[%s2689_s3 + $0x8] sm:$0xff]   ;;  %v1990_v37 = vld [vmem:[%s2689_s3] sm:$0xff]   ;;  %v1993_v49 = vld [vmem:[%s2691_s5 + $0x18] sm:$0xff]  }
  0x49   :  { %1856 = vmatpush3.bf16.msra.mxu1 %v1980_v1  ;;  %1875 = vmatprep.subr.bf16.mxu0 %v2149_v44  ;;  %v1991_v38 = vld [vmem:[%s2690_s4 + $0x8] sm:$0xff]   ;;  %v1660_v39 = vld [vmem:[%s2694_s8] ss:$0 sm:$0xff]  ;;  %v1994_v50 = vld [vmem:[%s2691_s5 + $0x10] sm:$0xff]  }
  0x4a   :  { %1857 = vmatprep.subr.bf16.mxu1 %v2149_v44  ;;  %v1992_v48 = vld [vmem:[%s2690_s4] sm:$0xff]   ;;  %v1995_v59 = vld [vmem:[%s2691_s5 + $0x8] sm:$0xff]   ;;  %v2002_v63 = vld [vmem:[%s2692_s6 + $0x194] ss:$28 sps:$4 sm:$0xff]  }
  0x4b   :  { %v1669_v51 = vld [vmem:[%s2695_s9] ss:$0 sm:$0xff]  ;;  %v1997_v61 = vld [vmem:[%s2692_s6 + $0x188] ss:$28 sps:$4 sm:$0xff]   ;;  %v2005_v0 = vld [vmem:[%s2692_s6 + $0x154] ss:$28 sps:$4 sm:$0xff]  }
  0x4c   :  { %1876 = vmatpush3.bf16.msra.mxu0 %v1988_v9  ;;  %v1996_v60 = vld [vmem:[%s2691_s5] sm:$0xff]   ;;  %v1999_v62 = vld [vmem:[%s2692_s6 + $0x18c] ss:$28 sps:$4 sm:$0xff]   ;;  %v2029_v8 = vld [vmem:[%s2692_s6 + $0x74] ss:$28 sps:$4 sm:$0xff]  }
  0x4d   :  { %1858 = vmatpush3.bf16.msra.mxu1 %v1981_v2  ;;  %1877 = vmatprep.subr.bf16.mxu0 %v2149_v44  ;;  %v2003_v1 = vld [vmem:[%s2692_s6 + $0x150] ss:$28 sps:$4 sm:$0xff]   ;;  %v2011_v2 = vld [vmem:[%s2692_s6 + $0x11c] ss:$28 sps:$4 sm:$0xff]  }
  0x4e   :  { %1859 = vmatprep.subr.bf16.mxu1 %v2149_v44  ;;  %v2027_v9 = vld [vmem:[%s2692_s6 + $0x70] ss:$28 sps:$4 sm:$0xff]  }
  0x50   :  { %1878 = vmatpush3.bf16.msra.mxu0 %v1989_v36  ;;  %v2042_v36 = vld [vmem:[%s2692_s6 + $0x8] ss:$28 sps:$4 sm:$0xff]  }
  0x51   :  { %1860 = vmatpush3.bf16.msra.mxu1 %v1982_v3  ;;  %1879 = vmatprep.subr.bf16.mxu0 %v2149_v44  ;;  %v2009_v3 = vld [vmem:[%s2692_s6 + $0x118] ss:$28 sps:$4 sm:$0xff]  }
  0x52   :  { %1861 = vmatprep.subr.bf16.mxu1 %v2149_v44 }
  0x54   :  { %1880 = vmatpush3.bf16.msra.mxu0 %v1990_v37  ;;  %v2047_v37 = vld [vmem:[%s2692_s6 + $0x19c] ss:$28 sps:$4 sm:$0xff]  }
  0x55   :  { %1862 = vmatpush3.bf16.msra.mxu1 %v1983_v4  ;;  %1893 = vmatprep.subr.bf16.mxu0 %v2149_v44  ;;  %v2017_v4 = vld [vmem:[%s2692_s6 + $0xe4] ss:$28 sps:$4 sm:$0xff]  }
  0x56   :  { %1863 = vmatprep.subr.bf16.mxu1 %v2149_v44 }
  0x59   :  { %1864 = vmatpush3.bf16.msra.mxu1 %v1984_v5  ;;  %v2015_v5 = vld [vmem:[%s2692_s6 + $0xe0] ss:$28 sps:$4 sm:$0xff]  }
  0x5a   :  { %1865 = vmatprep.subr.bf16.mxu1 %v2149_v44 }
  0x5d   :  { %1866 = vmatpush3.bf16.msra.mxu1 %v1985_v6  ;;  %v2023_v6 = vld [vmem:[%s2692_s6 + $0xac] ss:$28 sps:$4 sm:$0xff]  }
  0x5e   :  { %1867 = vmatprep.subr.bf16.mxu1 %v2149_v44 }
  0x61   :  { %1868 = vmatpush3.bf16.msra.mxu1 %v1986_v7  ;;  %v2021_v7 = vld [vmem:[%s2692_s6 + $0xa8] ss:$28 sps:$4 sm:$0xff]  }
  0x62   :  { %1885 = vmatprep.subr.bf16.mxu1 %v2149_v44 }
  0xe2   :  { %v1764_v10 = vpop.f32.mrf.mxu0 }
  0xe4   :  { %v1765_v11 = vpop.f32.mrf.mxu0  ;;  %v1786_v12 = vpop.f32.mrf.mxu1 }
  0xe5   :  { %v1766_v22 = vadd.f32 %v1765_v11, %v1764_v10  ;;  %v2035_v10 = vld [vmem:[%s2692_s6 + $0x3c] ss:$28 sps:$4 sm:$0xff]  }
  0xe6   :  { %v1767_v13 = vpop.f32.mrf.mxu0  ;;  %v1787_v14 = vpop.f32.mrf.mxu1  ;;  %v2033_v11 = vld [vmem:[%s2692_s6 + $0x38] ss:$28 sps:$4 sm:$0xff]  }
  0xe7   :  { %v501_v24 = vadd.f32 %v1766_v22, %v1609_v23  ;;  %v1788_v25 = vadd.f32 %v1787_v14, %v1786_v12  ;;  %v1675_v12 = vld [vmem:[%s2696_s10] ss:$0 sm:$0xff]  ;;  %v2006_v22 = vld [vmem:[%s2692_s6 + $0x158] ss:$28 sps:$4 sm:$0xff]   ;;  %s1597_s10 = sshll.u32 %s2152_s19, 4  ;;  %s1598_s10 = int_to_ptr.vmem [resolvable:$true] %s1597_s10 }
  0xe8   :  { %v1768_v15 = vpop.f32.mrf.mxu0  ;;  %v1789_v16 = vpop.f32.mrf.mxu1  ;;  %v2014_v23 = vld [vmem:[%s2692_s6 + $0x124] ss:$28 sps:$4 sm:$0xff]   ;;  %s2105_s20 = scalar_lea.vmem %s1598_s10, 128  ;;  %p2110_p1 = scmp.lt.s32.totalorder %s1598_s10, %s1598_s10 }
  0xe9   :  { %v541_v28 = vadd.f32 %v1788_v25, %v501_v24  ;;  %v2012_v24 = vld [vmem:[%s2692_s6 + $0x120] ss:$28 sps:$4 sm:$0xff]   ;;  %v2020_v25 = vld [vmem:[%s2692_s6 + $0xec] ss:$28 sps:$4 sm:$0xff]   ;;  %p2106_p0 = scmp.ne.s32.totalorder %s1598_s10, %s2105_s20  ;;  %p2111_p2 = scmp.lt.s32.totalorder %s2105_s20, %s2105_s20 }
  0xea   :  { %v1790_v17 = vpop.f32.mrf.mxu1 }
  0xeb   :  { %p2112_p3 = por %p2111_p2, %p2110_p1 }
  0xec   :  { %v620_v18 = vpop.f32.mrf.mxu1 }
  0xed   :  { %p2113_p4 = pnand %p2112_p3, %p2106_p0 }
  0xee   :  { %v1851_v19 = vpop.f32.mrf.mxu1 }
  0xf0   :  { %v623_v20 = vpop.f32.mrf.mxu1 }
  0xf1   :  { %v2008_v20 = vld [vmem:[%s2692_s6 + $0x15c] ss:$28 sps:$4 sm:$0xff]  }
  0xf2   :  { %v1852_v21 = vpop.f32.mrf.mxu1 }
 0x102   :  { %v1808_v26 = vpop.f32.mrf.mxu0 }
 0x104   :  { %v1809_v27 = vpop.f32.mrf.mxu0 }
 0x105   :  { %v1810_v29 = vadd.f32 %v1809_v27, %v1808_v26  ;;  %v2018_v26 = vld [vmem:[%s2692_s6 + $0xe8] ss:$28 sps:$4 sm:$0xff]   ;;  %v2026_v27 = vld [vmem:[%s2692_s6 + $0xb4] ss:$28 sps:$4 sm:$0xff]  }
 0x106   :  { %v1811_v30 = vpop.f32.mrf.mxu0 }
 0x107   :  { %v581_v31 = vadd.f32 %v1810_v29, %v541_v28  ;;  %v2024_v28 = vld [vmem:[%s2692_s6 + $0xb0] ss:$28 sps:$4 sm:$0xff]   ;;  %v2032_v29 = vld [vmem:[%s2692_s6 + $0x7c] ss:$28 sps:$4 sm:$0xff]  }
 0x108   :  { %v1812_v32 = vpop.f32.mrf.mxu0  ;;  %v2030_v30 = vld [vmem:[%s2692_s6 + $0x78] ss:$28 sps:$4 sm:$0xff]  }
 0x109   :  { %v621_v33 = vadd.f32 %v620_v18, %v581_v31  ;;  %v2000_v18 = vld [vmem:[%s2692_s6 + $0x190] ss:$28 sps:$4 sm:$0xff]   ;;  %v2038_v31 = vld [vmem:[%s2692_s6 + $0x44] ss:$28 sps:$4 sm:$0xff]  }
 0x10a   :  { %v2036_v32 = vld [vmem:[%s2692_s6 + $0x40] ss:$28 sps:$4 sm:$0xff]  }
 0x10b   :  { %v626_v34 = vmax.f32 %v621_v33, 0.0  ;;  %v2041_v33 = vld [vmem:[%s2692_s6 + $0x4] ss:$28 sps:$4 sm:$0xff]  }
 0x10d   :  { %v627_v35 = vpack.c.bf16 %v626_v34, %v626_v34  ;;  %v2044_v34 = vld [vmem:[%s2692_s6 + $0xc] ss:$28 sps:$4 sm:$0xff]  }
 0x10f   :  { %1870 = vmatmul.mubr.bf16.vlgmr.msra.gmra.mxu1 %v627_v35  ;;  %v2039_v35 = vld [vmem:[%s2692_s6] ss:$28 sps:$4 sm:$0xff]  }
 0x110   :  { %1889 = vmatprep.mubr.msk.bf16.mxu1 %vm2150_vm0, %v2149_v44  ;;  %1886 = vmatpush3.bf16.msra.mxu1 %v1991_v38  ;;  %v2151_v38 = vmov 0  }
 0x111   :  { %1887 = vmatprep.subr.bf16.mxu1 %v2149_v44 }
 0x114   :  { %1888 = vmatpush3.bf16.msra.mxu1 %v1992_v48 }
 0x115   :  { %1369 = vmatprep.subr.bf16.mxu1 %v1999_v62  ;;  %v2067_v62 = vld [vmem:[%s2692_s6 + $0x84] ss:$28 sps:$4 sm:$0xff]  }
 0x1cf   :  { %v733_v40 = vpop.f32.mrf.mxu1 }
 0x1d0   :  { %v734_v41 = vadd.f32 %v1660_v39, %v733_v40  ;;  %v1679_v39 = vld [vmem:[%s2697_s11] ss:$0 sm:$0xff] }
 0x1d1   :  { %v1871_v42 = vpop.f32.mrf.mxu1 }
 0x1d2   :  { %v739_v43 = vmax.f32 %v734_v41, 0.0 }
 0x1d3   :  { %v736_v45 = vpop.f32.mrf.mxu1 }
 0x1d4   :  { %v740_v46 = vpack.c.bf16 %v739_v43, %v739_v43 }
 0x1d5   :  { %v1872_v47 = vpop.f32.mrf.mxu1 }
 0x1d6   :  { %1882 = vmatmul.mubr.msk.bf16.vlgmr.msra.gmra.mxu0 %vm780_vm2, %v740_v46  ;;  %v2045_v46 = vld [vmem:[%s2692_s6 + $0x198] ss:$28 sps:$4 sm:$0xff]   ;;  %v2048_v47 = vld [vmem:[%s2692_s6 + $0x1a0] ss:$28 sps:$4 sm:$0xff]  }
 0x1d7   :  { %1901 = vmatprep.mubr.msk.bf16.mxu0 %vm2150_vm0, %v2149_v44  ;;  %1894 = vmatpush3.bf16.msra.mxu0 %v1993_v49  ;;  %v2051_v49 = vld [vmem:[%s2692_s6 + $0x164] ss:$28 sps:$4 sm:$0xff]  }
 0x1d8   :  { %1895 = vmatprep.subr.bf16.mxu0 %v2149_v44 }
 0x1db   :  { %1896 = vmatpush3.bf16.msra.mxu0 %v1994_v50 }
 0x1dc   :  { %1897 = vmatprep.subr.bf16.mxu0 %v2149_v44 }
 0x1df   :  { %1898 = vmatpush3.bf16.msra.mxu0 %v1995_v59  ;;  %v2063_v59 = vld [vmem:[%s2692_s6 + $0xbc] ss:$28 sps:$4 sm:$0xff]  }
 0x1e0   :  { %1899 = vmatprep.subr.bf16.mxu0 %v2149_v44 }
 0x1e3   :  { %1900 = vmatpush3.bf16.msra.mxu0 %v1996_v60  ;;  %v2061_v60 = vld [vmem:[%s2692_s6 + $0xb8] ss:$28 sps:$4 sm:$0xff]  }
 0x1e4   :  { %1410 = vmatprep.subr.bf16.mxu0 %v2002_v63  ;;  %v2065_v63 = vld [vmem:[%s2692_s6 + $0x80] ss:$28 sps:$4 sm:$0xff]  }
 0x296   :  { %v818_v52 = vpop.f32.mrf.mxu0 }
 0x297   :  { %v819_v53 = vadd.f32 %v1669_v51, %v818_v52  ;;  %v2049_v51 = vld [vmem:[%s2692_s6 + $0x160] ss:$28 sps:$4 sm:$0xff]   ;;  %v2052_v52 = vld [vmem:[%s2692_s6 + $0x168] ss:$28 sps:$4 sm:$0xff]  }
 0x298   :  { %v1883_v54 = vpop.f32.mrf.mxu0 }
 0x299   :  { %v824_v55 = vmax.f32 %v819_v53, 0.0  ;;  %v2055_v53 = vld [vmem:[%s2692_s6 + $0x12c] ss:$28 sps:$4 sm:$0xff]  }
 0x29a   :  { %v821_v56 = vpop.f32.mrf.mxu0  ;;  %v2053_v54 = vld [vmem:[%s2692_s6 + $0x128] ss:$28 sps:$4 sm:$0xff]  }
 0x29b   :  { %v827_v57 = vpack.c.bf16 %v824_v55, %v824_v55  ;;  %826 = vst.msk [vmem:[#allocation4] sm:$0xff] %vm825_vm3, %v824_v55  ;;  %v2056_v55 = vld [vmem:[%s2692_s6 + $0x130] ss:$28 sps:$4 sm:$0xff]  }
 0x29c   :  { %v1884_v58 = vpop.f32.mrf.mxu0  ;;  %v2059_v56 = vld [vmem:[%s2692_s6 + $0xf4] ss:$28 sps:$4 sm:$0xff]  }
 0x29d   :  { %1890 = vmatmul.mubr.msk.bf16.vlgmr.msra.gmra.mxu1 %vm825_vm3, %v827_v57  ;;  %v2057_v57 = vld [vmem:[%s2692_s6 + $0xf0] ss:$28 sps:$4 sm:$0xff]   ;;  %v2060_v58 = vld [vmem:[%s2692_s6 + $0xf8] ss:$28 sps:$4 sm:$0xff]  }
 0x29e   :  { %1370 = vmatpush1.bf16.msra.mxu1 %v1997_v61  ;;  %1401 = vmatprep.mubr.bf16.mxu1 %v2151_v38  ;;  %v2064_v61 = vld [vmem:[%s2692_s6 + $0xc0] ss:$28 sps:$4 sm:$0xff]  }
 0x29f   :  { %1371 = vmatprep.subr.bf16.mxu1 %v2005_v0  ;;  %v2068_v0 = vld [vmem:[%s2692_s6 + $0x88] ss:$28 sps:$4 sm:$0xff]  }
 0x2a2   :  { %1372 = vmatpush1.bf16.msra.mxu1 %v2003_v1  ;;  %v2071_v1 = vld [vmem:[%s2692_s6 + $0x4c] ss:$28 sps:$4 sm:$0xff]  }
 0x2a3   :  { %1373 = vmatprep.subr.bf16.mxu1 %v2011_v2  ;;  %v2069_v2 = vld [vmem:[%s2692_s6 + $0x48] ss:$28 sps:$4 sm:$0xff]  }
 0x2a6   :  { %1374 = vmatpush1.bf16.msra.mxu1 %v2009_v3  ;;  %v2072_v3 = vld [vmem:[%s2692_s6 + $0x50] ss:$28 sps:$4 sm:$0xff]  }
 0x2a7   :  { %1375 = vmatprep.subr.bf16.mxu1 %v2017_v4  ;;  %v2075_v4 = vld [vmem:[%s2692_s6 + $0x14] ss:$28 sps:$4 sm:$0xff]  }
 0x2aa   :  { %1376 = vmatpush1.bf16.msra.mxu1 %v2015_v5  ;;  %v2073_v5 = vld [vmem:[%s2692_s6 + $0x10] ss:$28 sps:$4 sm:$0xff]  }
 0x2ab   :  { %1377 = vmatprep.subr.bf16.mxu1 %v2023_v6  ;;  %v2076_v6 = vld [vmem:[%s2692_s6 + $0x18] ss:$28 sps:$4 sm:$0xff]  }
 0x2ae   :  { %1378 = vmatpush1.bf16.msra.mxu1 %v2021_v7 }
 0x2af   :  { %1379 = vmatprep.subr.bf16.mxu1 %v2029_v8 }
 0x2b2   :  { %1380 = vmatpush1.bf16.msra.mxu1 %v2027_v9 }
 0x2b3   :  { %1381 = vmatprep.subr.bf16.mxu1 %v2035_v10 }
 0x2b6   :  { %1382 = vmatpush1.bf16.msra.mxu1 %v2033_v11 }
 0x2b7   :  { %1383 = vmatprep.subr.bf16.mxu1 %v2041_v33 }
 0x2ba   :  { %1384 = vmatpush1.bf16.msra.mxu1 %v2039_v35 }
 0x2bb   :  { %1451 = vmatprep.subr.bf16.mxu1 %v2047_v37 }
 0x35d   :  { %v888_v13 = vpop.f32.mrf.mxu1 }
 0x35e   :  { %v889_v14 = vadd.f32 %v1675_v12, %v888_v13 }
 0x35f   :  { %v1891_v15 = vpop.f32.mrf.mxu1 }
 0x360   :  { %v894_v16 = vmax.f32 %v889_v14, 0.0 }
 0x361   :  { %v891_v17 = vpop.f32.mrf.mxu1 }
 0x362   :  { %v895_v19 = vpack.c.bf16 %v894_v16, %v894_v16 }
 0x363   :  { %v1892_v21 = vpop.f32.mrf.mxu1 }
 0x364   :  { %1902 = vmatmul.mubr.msk.bf16.vlgmr.msra.gmra.mxu0 %vm780_vm2, %v895_v19 }
 0x365   :  { %1411 = vmatpush1.bf16.msra.mxu0 %v2000_v18  ;;  %1442 = vmatprep.mubr.bf16.mxu0 %v2151_v38 }
 0x366   :  { %1412 = vmatprep.subr.bf16.mxu0 %v2008_v20 }
 0x369   :  { %1413 = vmatpush1.bf16.msra.mxu0 %v2006_v22 }
 0x36a   :  { %1414 = vmatprep.subr.bf16.mxu0 %v2014_v23 }
 0x36d   :  { %1415 = vmatpush1.bf16.msra.mxu0 %v2012_v24 }
 0x36e   :  { %1416 = vmatprep.subr.bf16.mxu0 %v2020_v25 }
 0x371   :  { %1417 = vmatpush1.bf16.msra.mxu0 %v2018_v26 }
 0x372   :  { %1418 = vmatprep.subr.bf16.mxu0 %v2026_v27 }
 0x375   :  { %1419 = vmatpush1.bf16.msra.mxu0 %v2024_v28 }
 0x376   :  { %1420 = vmatprep.subr.bf16.mxu0 %v2032_v29 }
 0x379   :  { %1421 = vmatpush1.bf16.msra.mxu0 %v2030_v30 }
 0x37a   :  { %1422 = vmatprep.subr.bf16.mxu0 %v2038_v31 }
 0x37d   :  { %1423 = vmatpush1.bf16.msra.mxu0 %v2036_v32 }
 0x37e   :  { %1424 = vmatprep.subr.bf16.mxu0 %v2044_v34 }
 0x381   :  { %1425 = vmatpush1.bf16.msra.mxu0 %v2042_v36 }
 0x382   :  { %1905 = vmatprep.subr.bf16.mxu0 %v2149_v44 }
 0x424   :  { %v972_v40 = vpop.f32.mrf.mxu0 }
 0x425   :  { %v973_v41 = vadd.f32 %v1679_v39, %v972_v40 }
 0x426   :  { %v1903_v42 = vpop.f32.mrf.mxu0 }
 0x427   :  { %v978_v43 = vmax.f32 %v973_v41, 0.0 }
 0x428   :  { %v975_v45 = vpop.f32.mrf.mxu0 }
 0x429   :  { %v979_v48 = vpack.c.bf16 %v978_v43, %v978_v43 }
 0x42a   :  { %v1904_v50 = vpop.f32.mrf.mxu0 }
 0x42b   :  { %1402 = vmatmul.mubr.bf16.vlgmr.msra.gmra.mxu1 %v979_v48  ;;  %1443 = vmatmul.mubr.bf16.vlgmr.msra.gmra.mxu0 %v979_v48 }
 0x42c   :  { %1452 = vmatpush1.bf16.msra.mxu1 %v2045_v46  ;;  %1906 = vmatpush3.bf16.msra.mxu0 %v2048_v47 }
 0x42d   :  { %1453 = vmatprep.subr.bf16.mxu1 %v2051_v49  ;;  %1907 = vmatprep.subr.bf16.mxu0 %v2149_v44 }
 0x42e   :  { %1483 = vmatprep.mubr.bf16.mxu1 %v2151_v38  ;;  %1921 = vmatprep.mubr.msk.bf16.mxu0 %vm2150_vm0, %v2149_v44 }
 0x430   :  { %1454 = vmatpush1.bf16.msra.mxu1 %v2049_v51  ;;  %1908 = vmatpush3.bf16.msra.mxu0 %v2052_v52 }
 0x431   :  { %1455 = vmatprep.subr.bf16.mxu1 %v2055_v53  ;;  %1909 = vmatprep.subr.bf16.mxu0 %v2149_v44 }
 0x434   :  { %1456 = vmatpush1.bf16.msra.mxu1 %v2053_v54  ;;  %1910 = vmatpush3.bf16.msra.mxu0 %v2056_v55 }
 0x435   :  { %1457 = vmatprep.subr.bf16.mxu1 %v2059_v56  ;;  %1911 = vmatprep.subr.bf16.mxu0 %v2149_v44 }
 0x438   :  { %1458 = vmatpush1.bf16.msra.mxu1 %v2057_v57  ;;  %1912 = vmatpush3.bf16.msra.mxu0 %v2060_v58 }
 0x439   :  { %1459 = vmatprep.subr.bf16.mxu1 %v2063_v59  ;;  %1913 = vmatprep.subr.bf16.mxu0 %v2149_v44 }
 0x43c   :  { %1460 = vmatpush1.bf16.msra.mxu1 %v2061_v60  ;;  %1914 = vmatpush3.bf16.msra.mxu0 %v2064_v61 }
 0x43d   :  { %1461 = vmatprep.subr.bf16.mxu1 %v2067_v62  ;;  %1915 = vmatprep.subr.bf16.mxu0 %v2149_v44 }
 0x440   :  { %1462 = vmatpush1.bf16.msra.mxu1 %v2065_v63  ;;  %1916 = vmatpush3.bf16.msra.mxu0 %v2068_v0 }
 0x441   :  { %1463 = vmatprep.subr.bf16.mxu1 %v2071_v1  ;;  %1917 = vmatprep.subr.bf16.mxu0 %v2149_v44 }
 0x444   :  { %1464 = vmatpush1.bf16.msra.mxu1 %v2069_v2  ;;  %1918 = vmatpush3.bf16.msra.mxu0 %v2072_v3 }
 0x445   :  { %1465 = vmatprep.subr.bf16.mxu1 %v2075_v4  ;;  %1919 = vmatprep.subr.bf16.mxu0 %v2149_v44 }
 0x448   :  { %1466 = vmatpush1.bf16.msra.mxu1 %v2073_v5  ;;  %1920 = vmatpush3.bf16.msra.mxu0 %v2076_v6 }
 0x44b   :  { %1484 = vmatmul.mubr.bf16.vlgmr.msra.gmra.mxu1 %v979_v48  ;;  %1922 = vmatmul.mubr.bf16.vlgmr.msra.gmra.mxu0 %v979_v48 }
 0x44c   :  { %2116 = shalt.err (!%p2113_p4)
}
 0x44d   :  { %1600 = dma.vmem_to_hbm [thread:$0]  %s1598_s10, 128, %s2700_s14, [#allocation5]   ;;  %v1046_v7 = vlaneseq  ;;  %v1044_v10 = vld [vmem:[%s2698_s12] sm:$0x7f] }
 0x44e   :  { %s2153_s12 = smov [#allocation2]  }
 0x44f   :  { %v1047_v44 = vshrl.u32 %v1046_v7, 7  ;;  %s1587_s14 = sshll.u32 %s2153_s12, 4  ;;  %s1588_s14 = int_to_ptr.vmem [resolvable:$true] %s1587_s14 }
 0x450   :  { %s2125_s8 = scalar_lea.vmem %s1588_s14, 896  ;;  %p2130_p6 = scmp.lt.s32.totalorder %s1588_s14, %s1588_s14 }
 0x451   :  { %v1048_v8 = vsub.s32 0, %v1047_v44  ;;  %v1056_v9 = vsub.s32 2, %v1047_v44  ;;  %v1052_v11 = vsub.s32 1, %v1047_v44  ;;  %v1060_v12 = vsub.s32 3, %v1047_v44  ;;  %p2126_p5 = scmp.ne.s32.totalorder %s1588_s14, %s2125_s8  ;;  %p2131_p7 = scmp.lt.s32.totalorder %s2125_s8, %s2125_s8 }
 0x452   :  { %v1064_v41 = vsub.s32 4, %v1047_v44  ;;  %v1072_v42 = vsub.s32 6, %v1047_v44  ;;  %v1068_v43 = vsub.s32 5, %v1047_v44 }
 0x453   :  { %v1049_v13 = vrot.slane %v1044_v10, %v1048_v8  ;;  %v1057_v14 = vrot.slane %v1044_v10, %v1056_v9  ;;  %v1053_v15 = vrot.slane %v1044_v10, %v1052_v11  ;;  %v1061_v16 = vrot.slane %v1044_v10, %v1060_v12  ;;  %p2132_p8 = por %p2131_p7, %p2130_p6 }
 0x454   :  { %v1065_v45 = vrot.slane %v1044_v10, %v1064_v41  ;;  %v1073_v46 = vrot.slane %v1044_v10, %v1072_v42  ;;  %v1069_v47 = vrot.slane %v1044_v10, %v1068_v43 }
 0x455   :  { %p2133_p9 = pnand %p2132_p8, %p2126_p5 }
 0x4eb   :  { %v1403_v17 = vpop.f32.mrf.mxu1  ;;  %v1444_v18 = vpop.f32.mrf.mxu0 }
 0x4ec   :  { %v1404_v19 = vadd.f32 %v1403_v17, %v1049_v13  ;;  %v1445_v20 = vadd.f32 %v1444_v18, %v1057_v14 }
 0x4ed   :  { %v1405_v21 = vpop.f32.mrf.mxu1  ;;  %v1446_v22 = vpop.f32.mrf.mxu0 }
 0x4ee   :  { %v1741_v23 = vmul.f32 -1.442695, %v1404_v19  ;;  %v1743_v24 = vmul.f32 -1.442695, %v1445_v20  ;;  %v1406_v25 = vadd.f32 %v1405_v21, %v1053_v15  ;;  %v1447_v26 = vadd.f32 %v1446_v22, %v1061_v16 }
 0x4ef   :  { %v1407_v27 = vpop.f32.mrf.mxu1  ;;  %v1448_v28 = vpop.f32.mrf.mxu0 }
 0x4f0   :  { %2077 = vpow2.f32 %v1741_v23  ;;  %v1742_v29 = vmul.f32 -1.442695, %v1406_v25  ;;  %v1744_v30 = vmul.f32 -1.442695, %v1447_v26 }
 0x4f1   :  { %2079 = vpow2.f32 %v1743_v24  ;;  %v1408_v31 = vpop.f32.mrf.mxu1  ;;  %v1449_v32 = vpop.f32.mrf.mxu0 }
 0x4f2   :  { %2081 = vpow2.f32 %v1742_v29 }
 0x4f3   :  { %2083 = vpow2.f32 %v1744_v30 }
 0x4fd   :  { %v2078_v33 = vpop.eup %2077 }
 0x4fe   :  { %v2080_v34 = vpop.eup %2079  ;;  %v1553_v35 = vadd.f32 1.0, %v2078_v33 }
 0x4ff   :  { %v2082_v36 = vpop.eup %2081  ;;  %v1555_v37 = vadd.f32 1.0, %v2080_v34 }
 0x500   :  { %v2084_v38 = vpop.eup %2083  ;;  %2085 = vrcp.f32 %v1553_v35  ;;  %v1554_v39 = vadd.f32 1.0, %v2082_v36 }
 0x501   :  { %2087 = vrcp.f32 %v1555_v37  ;;  %v1556_v40 = vadd.f32 1.0, %v2084_v38 }
 0x502   :  { %2089 = vrcp.f32 %v1554_v39 }
 0x503   :  { %2091 = vrcp.f32 %v1556_v40 }
 0x50b   :  { %v1485_v48 = vpop.f32.mrf.mxu1  ;;  %v1526_v49 = vpop.f32.mrf.mxu0 }
 0x50c   :  { %v1486_v50 = vadd.f32 %v1485_v48, %v1065_v45  ;;  %v1527_v51 = vadd.f32 %v1526_v49, %v1073_v46 }
 0x50d   :  { %v2086_v52 = vpop.eup %2085  ;;  %v1487_v53 = vpop.f32.mrf.mxu1 }
 0x50e   :  { %v1923_v54 = vpop.f32.mrf.mxu0  ;;  %v2088_v55 = vpop.eup %2087  ;;  %1574 = vst [vmem:[#allocation2] sm:$0xff] %v2086_v52  ;;  %v1745_v56 = vmul.f32 -1.442695, %v1486_v50  ;;  %v1747_v57 = vmul.f32 -1.442695, %v1527_v51  ;;  %v1488_v58 = vadd.f32 %v1487_v53, %v1069_v47 }
 0x50f   :  { %v2090_v59 = vpop.eup %2089  ;;  %1576 = vst [vmem:[#allocation2 + $0x10] sm:$0xff] %v2088_v55  ;;  %v1489_v60 = vpop.f32.mrf.mxu1 }
 0x510   :  { %v1529_v61 = vpop.f32.mrf.mxu0  ;;  %v2092_v62 = vpop.eup %2091  ;;  %1575 = vst [vmem:[#allocation2 + $0x8] sm:$0xff] %v2090_v59  ;;  %2093 = vpow2.f32 %v1745_v56  ;;  %v1746_v63 = vmul.f32 -1.442695, %v1488_v58 }
 0x511   :  { %1577 = vst [vmem:[#allocation2 + $0x18] sm:$0xff] %v2092_v62  ;;  %2095 = vpow2.f32 %v1747_v57  ;;  %v1490_v0 = vpop.f32.mrf.mxu1 }
 0x512   :  { %v1924_v1 = vpop.f32.mrf.mxu0  ;;  %2097 = vpow2.f32 %v1746_v63 }
 0x51d   :  { %v2094_v2 = vpop.eup %2093 }
 0x51e   :  { %v2096_v3 = vpop.eup %2095  ;;  %v1557_v4 = vadd.f32 1.0, %v2094_v2 }
 0x51f   :  { %v2098_v5 = vpop.eup %2097  ;;  %v1559_v6 = vadd.f32 1.0, %v2096_v3 }
 0x520   :  { %2099 = vrcp.f32 %v1557_v4  ;;  %v1558_v7 = vadd.f32 1.0, %v2098_v5 }
 0x521   :  { %2101 = vrcp.f32 %v1559_v6 }
 0x522   :  { %2103 = vrcp.f32 %v1558_v7 }
 0x52d   :  { %v2100_v44 = vpop.eup %2099 }
 0x52e   :  { %v2102_v8 = vpop.eup %2101  ;;  %1578 = vst [vmem:[#allocation2 + $0x20] sm:$0xff] %v2100_v44 }
 0x52f   :  { %v2104_v9 = vpop.eup %2103  ;;  %1580 = vst.msk [vmem:[#allocation2 + $0x30] sm:$0xff] %vm462_vm1, %v2102_v8 }
 0x530   :  { %1579 = vst [vmem:[#allocation2 + $0x28] sm:$0xff] %v2104_v9 }
 0x531   :  { %2136 = shalt.err (!%p2133_p9)
}
 0x532   :  { %1590 = dma.vmem_to_hbm [thread:$0]  %s1588_s14, 896, %s2699_s13, [#allocation3]  }
 0x533   :  { %2145 = dma.done.wait [#allocation3], 896  }
 0x534   :  { %2146 = vsyncadd [#allocation3], 4294966400 }
 0x535   :  { %2147 = dma.done.wait [#allocation5], 128  }
 0x536   :  { %2148 = vsyncadd [#allocation5], 4294967168 }
 0x537   :  { %1607 = vsyncpa [#allocation3], 1 }
 0x538   :  { %1608 = vsyncpa [#allocation5], 1 }

</bundles_post_ra>
